<compile_context>
chip_gen: v7x
topology: tpu7x:2x2x1
jax: 0.10.0
libtpu: 0.0.40
codegen_flags: <defaults>
</compile_context>

<pallas_src>
import jax
import jax.numpy as jnp
from jax.experimental import pallas as pl
from jax.experimental.pallas import tpu as pltpu

CP = 8     # channel-slot height (f32 sublane tile) used for the im2col K layout
NTAP = 9   # 3x3 taps


def _round_up(x, m):
    return (x + m - 1) // m * m


def _num_tensorcores_per_chip():
    """Best-effort detection: v7x / v5p / v4 / v3 have 2 TensorCores, v5e / v6e have 1."""
    try:
        kind = jax.devices()[0].device_kind.lower()
    except Exception:
        return 1
    if any(tag in kind for tag in ("v7", "v4", "v3")):
        return 2
    if "v5p" in kind or kind.strip().endswith("v5"):
        return 2
    return 1


def _fold_params(w1_hwio, b1, bn_scale, bn_shift, w2_io, b2, dtype):
    """Fold eval-mode BN into the 3x3 weights and lay everything out for the kernel's
    (HID, K) @ (K, NB*H*W) GEMMs.  Biases stay f32 (the epilogue runs in f32)."""
    KH, KW, C, HID = w1_hwio.shape
    scale = bn_scale.reshape(-1).astype(jnp.float32)
    shift = bn_shift.reshape(-1).astype(jnp.float32)
    # BN(conv(x) + b1) == conv_{w*scale}(x) + (b1*scale + shift)
    w1f = w1_hwio.astype(jnp.float32) * scale[None, None, None, :]
    bias1 = (b1.reshape(-1).astype(jnp.float32) * scale + shift).reshape(HID, 1)
    # (3,3,C,HID) -> (9*CP, HID): one CP-row slot per tap, channels zero-padded to CP.
    w1f = jnp.pad(w1f, ((0, 0), (0, 0), (0, CP - C), (0, 0)))
    w1a = w1f.reshape(KH * KW * CP, HID).T                     # (HID, 9*CP)
    w2a = w2_io.reshape(HID, 1).astype(jnp.float32).T          # (1, HID)
    b2a = b2.reshape(1,).astype(jnp.float32)                   # (1,) scalar, SMEM
    return w1a.astype(dtype), bias1, w2a.astype(dtype), b2a


def loc_forward(x_nchw, w1_hwio, b1, bn_scale, bn_shift, w2_io, b2,
                *, compute_dtype=jnp.float32, num_steps=None):
    """forward(x) = res(forward_once(x)); x is NCHW like the PyTorch module."""
    N, C, H, W = x_nchw.shape
    assert C <= CP, "demo kernel packs all input channels into one CP-row K slot"
    HID = w1_hwio.shape[3]
    HW = H * W
    KTOT = NTAP * CP

    if num_steps is None:
        # 2 "parallel" steps to feed both TensorCores on 2-TC chips; otherwise collapse the
        # batch into a single lane-packed step (per-step overhead dominates this tiny body).
        num_steps = 2 if (_num_tensorcores_per_chip() >= 2 and N >= 2 and N % 2 == 0) else 1
    assert N % num_steps == 0
    NB = N // num_steps                            # images packed per step along the lane axis

    FRONT = _round_up(W + 1, 128)                  # >= W+1 leading zeros, lane aligned
    SEG = FRONT + _round_up(HW + W + 1, 128)       # per-image segment, >= W+1 trailing zeros
    TAIL = SEG - FRONT - HW

    w1a, bias1, w2a, b2a = _fold_params(w1_hwio, b1, bn_scale, bn_shift, w2_io, b2,
                                        compute_dtype)
    # Free reshape + tiny channel pad (C -> CP) so the in-kernel staging copy writes full
    # (CP, HW) unmasked vregs and covers rows C:CP (no per-step row zero-fill).
    x3 = jnp.pad(x_nchw.reshape(N, C, HW),
                 ((0, 0), (0, CP - C), (0, 0))).astype(compute_dtype)

    def kernel(x_ref, w1_ref, b1_ref, w2_ref, b2_ref, out_ref, xp_ref, pt_ref):
        cd = xp_ref.dtype
        # Row-edge wrap masks for the left/right taps, hoisted out of the unrolled tap loop.
        col = jax.lax.broadcasted_iota(jnp.int32, (CP, HW), 1) % W
        not_left = col >= 1              # pixel has a left neighbour in the same row
        not_right = col <= W - 2         # pixel has a right neighbour in the same row
        zero_tap = jnp.zeros((CP, HW), cd)

        # --- stage each image into its zero-padded segment (implicit "same" padding) ------
        for b in range(NB):
            base = b * SEG
            xp_ref[:, base:base + FRONT] = jnp.zeros((CP, FRONT), cd)
            xp_ref[:, base + FRONT + HW:base + SEG] = jnp.zeros((CP, TAIL), cd)
            xp_ref[:, base + FRONT:base + FRONT + HW] = x_ref[b]

        # --- im2col: one CP-row slot per 3x3 tap from lane-shifted views -------------------
        for b in range(NB):
            base = b * SEG + FRONT
            for ky in range(3):
                for kx in range(3):
                    s = (ky - 1) * W + (kx - 1)
                    tap = xp_ref[:, base + s:base + s + HW]          # (CP, HW)
                    if kx == 0:
                        tap = jnp.where(not_left, tap, zero_tap)
                    elif kx == 2:
                        tap = jnp.where(not_right, tap, zero_tap)
                    slot = ky * 3 + kx
                    pt_ref[slot * CP:(slot + 1) * CP, b * HW:(b + 1) * HW] = tap

        # --- fused conv3x3 + folded BN as one MXU GEMM; bias + ReLU in the f32 epilogue ----
        acc = jnp.dot(w1_ref[...], pt_ref[...],
                      preferred_element_type=jnp.float32)            # (HID, NB*HW)
        h = jnp.maximum(acc + b1_ref[...], 0.0)                      # f32, stays in vregs

        # --- 1x1 localization head straight off `h` (no VMEM round-trip), lane-dense store -
        y = jnp.dot(w2_ref[...], h.astype(cd),
                    preferred_element_type=jnp.float32)              # (1, NB*HW)
        y = y + b2_ref[0]
        out_ref[...] = y.reshape(1, 1, NB * HW).astype(out_ref.dtype)

    out = pl.pallas_call(
        kernel,
        out_shape=jax.ShapeDtypeStruct((num_steps, 1, NB * HW), jnp.float32),
        grid_spec=pltpu.PrefetchScalarGridSpec(
            num_scalar_prefetch=0,
            grid=(num_steps,),
            in_specs=[
                pl.BlockSpec((NB, CP, HW), lambda n: (n, 0, 0)),    # NB packed images
                pl.BlockSpec((HID, KTOT), lambda n: (0, 0)),        # folded 3x3 weights
                pl.BlockSpec((HID, 1), lambda n: (0, 0)),           # folded conv bias + BN shift
                pl.BlockSpec((1, HID), lambda n: (0, 0)),           # 1x1 head weights
                pl.BlockSpec(memory_space=pltpu.MemorySpace.SMEM),  # head bias (scalar)
            ],
            out_specs=pl.BlockSpec((1, 1, NB * HW), lambda n: (n, 0, 0)),
            scratch_shapes=[
                pltpu.VMEM((CP, NB * SEG), compute_dtype),    # zero-padded flat images
                pltpu.VMEM((KTOT, NB * HW), compute_dtype),   # im2col patch matrix
            ],
        ),
        compiler_params=pltpu.CompilerParams(
            dimension_semantics=("parallel",)),
    )(x3, w1a, bias1, w2a, b2a)

    return out.reshape(N, 1, H, W)   # back to PyTorch NCHW convention: (N, 1, H, W)


def _init_params(key, c_in, hidden):
    """Deterministic analogue of LocModel._initialize_weights():
       kaiming_normal_ for conv weights, zero biases, BN weight=1 / bias=0."""
    k1, k2 = jax.random.split(key)

    # Conv2d(c_in, hidden, 3): fan_in = c_in*9
    fan_in1 = c_in * 3 * 3
    std1 = (2.0 / fan_in1) ** 0.5
    w1_hwio = std1 * jax.random.normal(k1, (3, 3, c_in, hidden), jnp.float32)
    b1 = jnp.zeros((1, hidden), jnp.float32)

    # BatchNorm2d(hidden), eval mode with default running stats:
    # gamma=1, beta=0, running_mean=0, running_var=1, eps=1e-5
    eps = 1e-5
    gamma = jnp.ones((hidden,), jnp.float32)
    beta = jnp.zeros((hidden,), jnp.float32)
    r_mean = jnp.zeros((hidden,), jnp.float32)
    r_var = jnp.ones((hidden,), jnp.float32)
    scale = (gamma / jnp.sqrt(r_var + eps)).reshape(1, hidden)
    shift = (beta - r_mean * gamma / jnp.sqrt(r_var + eps)).reshape(1, hidden)

    # Conv2d(hidden, 1, 1): fan_in = hidden
    std2 = (2.0 / hidden) ** 0.5
    w2_io = std2 * jax.random.normal(k2, (hidden, 1), jnp.float32)
    b2 = jnp.zeros((1, 1), jnp.float32)

    return w1_hwio, b1, scale, shift, w2_io, b2


def _reference(x_nchw, w1_hwio, b1, scale, shift, w2_io, b2):
    """Pure-JAX reference of the same forward pass (for correctness check)."""
    x = jnp.transpose(x_nchw, (0, 2, 3, 1)).astype(jnp.float32)
    h = jax.lax.conv_general_dilated(
        x, w1_hwio, window_strides=(1, 1), padding="SAME",
        dimension_numbers=("NHWC", "HWIO", "NHWC"),
        precision=jax.lax.Precision.HIGHEST)
    h = h + b1.reshape(1, 1, 1, -1)
    h = h * scale.reshape(1, 1, 1, -1) + shift.reshape(1, 1, 1, -1)
    h = jnp.maximum(h, 0.0)
    y = jnp.einsum("nhwc,co->nhwo", h, w2_io,
                   precision=jax.lax.Precision.HIGHEST) + b2.reshape(1, 1, 1, -1)
    return jnp.transpose(y, (0, 3, 1, 2))


if __name__ == "__main__":
    N, C, H, W = 2, 4, 16, 16
    HIDDEN = 32

    key = jax.random.PRNGKey(0)
    kx, kp = jax.random.split(key)
    x = jax.random.normal(kx, (N, C, H, W), jnp.float32)  # NCHW, like PyTorch

    params = _init_params(kp, C, HIDDEN)

    out = jax.block_until_ready(loc_forward(x, *params))
    assert out.shape == (N, 1, H, W), out.shape

    ref = jax.block_until_ready(_reference(x, *params))
    max_err = float(jnp.max(jnp.abs(out - ref)))
    assert jnp.allclose(out, ref, rtol=5e-4, atol=5e-4), max_err

    print("KERNEL_OK")
</pallas_src>

<mosaic_0001>
module attributes {stable_mosaic.version = 11 : i64} {
  func.func @kernel(%arg0: i32, %arg1: memref<2x8x256xf32, #tpu.memory_space<vmem>>, %arg2: memref<32x72xf32, #tpu.memory_space<vmem>>, %arg3: memref<32x1xf32, #tpu.memory_space<vmem>>, %arg4: memref<1x32xf32, #tpu.memory_space<vmem>>, %arg5: memref<1xf32, #tpu.memory_space<smem>>, %arg6: memref<1x1x512xf32, #tpu.memory_space<vmem>>, %arg7: memref<8x1024xf32, #tpu.memory_space<vmem>>, %arg8: memref<72x512xf32, #tpu.memory_space<vmem>>) attributes {dimension_semantics = [#tpu.dimension_semantics<parallel>], iteration_bounds = array<i64: 1>, scalar_prefetch = 0 : i64, scratch_operands = 2 : i64, tpu.core_type = #tpu.core_type<tc>, window_params = [{transform_indices = @transform_0, window_bounds = array<i64: 2, 8, 256>}, {pipeline_mode = #tpu.pipeline_mode<synchronous>, transform_indices = @transform_1, window_bounds = array<i64: 32, 72>}, {pipeline_mode = #tpu.pipeline_mode<synchronous>, transform_indices = @transform_2, window_bounds = array<i64: 32, 1>}, {pipeline_mode = #tpu.pipeline_mode<synchronous>, transform_indices = @transform_3, window_bounds = array<i64: 1, 32>}, {transform_indices = @transform_4, window_bounds = array<i64: 1>}, {transform_indices = @transform_5, window_bounds = array<i64: 1, 1, 512>}]} {
    %0 = tpu.iota {dimensions = array<i32: 1>} : vector<8x256xi32>
    %c16_i32 = arith.constant 16 : i32
    %c0_i32 = arith.constant 0 : i32
    %1 = arith.cmpi eq, %c16_i32, %c0_i32 : i32
    %c1_i32 = arith.constant 1 : i32
    %2 = arith.select %1, %c1_i32, %c16_i32 : i32
    %3 = vector.broadcast %2 : i32 to vector<8x256xi32>
    %4 = arith.remsi %0, %3 : vector<8x256xi32>
    %c0_i32_0 = arith.constant 0 : i32
    %5 = vector.broadcast %c0_i32_0 : i32 to vector<8x256xi32>
    %6 = arith.cmpi ne, %4, %5 : vector<8x256xi32>
    %c0_i32_1 = arith.constant 0 : i32
    %7 = vector.broadcast %c0_i32_1 : i32 to vector<8x256xi32>
    %8 = arith.cmpi slt, %4, %7 : vector<8x256xi32>
    %c0_i32_2 = arith.constant 0 : i32
    %9 = arith.cmpi slt, %2, %c0_i32_2 : i32
    %10 = vector.broadcast %9 : i1 to vector<8x256xi1>
    %11 = vector.broadcast %10 : vector<8x256xi1> to vector<8x256xi1>
    %12 = arith.xori %8, %11 : vector<8x256xi1>
    %13 = arith.andi %12, %6 : vector<8x256xi1>
    %14 = vector.broadcast %2 : i32 to vector<8x256xi32>
    %15 = arith.addi %4, %14 : vector<8x256xi32>
    %16 = arith.select %13, %15, %4 : vector<8x256xi1>, vector<8x256xi32>
    %c1_i32_3 = arith.constant 1 : i32
    %17 = vector.broadcast %c1_i32_3 : i32 to vector<8x256xi32>
    %18 = arith.cmpi sge, %16, %17 : vector<8x256xi32>
    %c14_i32 = arith.constant 14 : i32
    %19 = vector.broadcast %c14_i32 : i32 to vector<8x256xi32>
    %20 = arith.cmpi sle, %16, %19 : vector<8x256xi32>
    %cst = arith.constant 0.000000e+00 : f32
    %21 = vector.broadcast %cst : f32 to vector<8x256xf32>
    %cst_4 = arith.constant 0.000000e+00 : f32
    %22 = vector.broadcast %cst_4 : f32 to vector<8x128xf32>
    %c0 = arith.constant 0 : index
    %c0_5 = arith.constant 0 : index
    %23 = vector.load %arg7[%c0, %c0_5] : memref<8x1024xf32, #tpu.memory_space<vmem>>, vector<8x128xf32>
    tpu.vector_store %arg7[%c0, %c0_5], %22 {strides = array<i32>} : memref<8x1024xf32, #tpu.memory_space<vmem>>, vector<8x128xf32>,
    %cst_6 = arith.constant 0.000000e+00 : f32
    %24 = vector.broadcast %cst_6 : f32 to vector<8x128xf32>
    %c0_7 = arith.constant 0 : index
    %c384 = arith.constant 384 : index
    %25 = vector.load %arg7[%c0_7, %c384] : memref<8x1024xf32, #tpu.memory_space<vmem>>, vector<8x128xf32>
    tpu.vector_store %arg7[%c0_7, %c384], %24 {strides = array<i32>} : memref<8x1024xf32, #tpu.memory_space<vmem>>, vector<8x128xf32>,
    %c0_8 = arith.constant 0 : index
    %c0_9 = arith.constant 0 : index
    %c0_10 = arith.constant 0 : index
    %26 = vector.load %arg1[%c0_8, %c0_9, %c0_10] : memref<2x8x256xf32, #tpu.memory_space<vmem>>, vector<1x8x256xf32>
    %27 = vector.shape_cast %26 : vector<1x8x256xf32> to vector<8x256xf32>
    %c0_11 = arith.constant 0 : index
    %c128 = arith.constant 128 : index
    %28 = vector.load %arg7[%c0_11, %c128] : memref<8x1024xf32, #tpu.memory_space<vmem>>, vector<8x256xf32>
    tpu.vector_store %arg7[%c0_11, %c128], %27 {strides = array<i32>} : memref<8x1024xf32, #tpu.memory_space<vmem>>, vector<8x256xf32>,
    %cst_12 = arith.constant 0.000000e+00 : f32
    %29 = vector.broadcast %cst_12 : f32 to vector<8x128xf32>
    %c0_13 = arith.constant 0 : index
    %c512 = arith.constant 512 : index
    %30 = vector.load %arg7[%c0_13, %c512] : memref<8x1024xf32, #tpu.memory_space<vmem>>, vector<8x128xf32>
    tpu.vector_store %arg7[%c0_13, %c512], %29 {strides = array<i32>} : memref<8x1024xf32, #tpu.memory_space<vmem>>, vector<8x128xf32>,
    %cst_14 = arith.constant 0.000000e+00 : f32
    %31 = vector.broadcast %cst_14 : f32 to vector<8x128xf32>
    %c0_15 = arith.constant 0 : index
    %c896 = arith.constant 896 : index
    %32 = vector.load %arg7[%c0_15, %c896] : memref<8x1024xf32, #tpu.memory_space<vmem>>, vector<8x128xf32>
    tpu.vector_store %arg7[%c0_15, %c896], %31 {strides = array<i32>} : memref<8x1024xf32, #tpu.memory_space<vmem>>, vector<8x128xf32>,
    %c1 = arith.constant 1 : index
    %c0_16 = arith.constant 0 : index
    %c0_17 = arith.constant 0 : index
    %33 = vector.load %arg1[%c1, %c0_16, %c0_17] : memref<2x8x256xf32, #tpu.memory_space<vmem>>, vector<1x8x256xf32>
    %34 = vector.shape_cast %33 : vector<1x8x256xf32> to vector<8x256xf32>
    %c0_18 = arith.constant 0 : index
    %c640 = arith.constant 640 : index
    %35 = vector.load %arg7[%c0_18, %c640] : memref<8x1024xf32, #tpu.memory_space<vmem>>, vector<8x256xf32>
    tpu.vector_store %arg7[%c0_18, %c640], %34 {strides = array<i32>} : memref<8x1024xf32, #tpu.memory_space<vmem>>, vector<8x256xf32>,
    %c0_19 = arith.constant 0 : index
    %c111 = arith.constant 111 : index
    %36 = vector.load %arg7[%c0_19, %c111] : memref<8x1024xf32, #tpu.memory_space<vmem>>, vector<8x256xf32>
    %37 = arith.select %18, %36, %21 : vector<8x256xi1>, vector<8x256xf32>
    %c0_20 = arith.constant 0 : index
    %c0_21 = arith.constant 0 : index
    %38 = vector.load %arg8[%c0_20, %c0_21] : memref<72x512xf32, #tpu.memory_space<vmem>>, vector<8x256xf32>
    tpu.vector_store %arg8[%c0_20, %c0_21], %37 {strides = array<i32>} : memref<72x512xf32, #tpu.memory_space<vmem>>, vector<8x256xf32>,
    %c0_22 = arith.constant 0 : index
    %c112 = arith.constant 112 : index
    %39 = vector.load %arg7[%c0_22, %c112] : memref<8x1024xf32, #tpu.memory_space<vmem>>, vector<8x256xf32>
    %c8 = arith.constant 8 : index
    %c0_23 = arith.constant 0 : index
    %40 = vector.load %arg8[%c8, %c0_23] : memref<72x512xf32, #tpu.memory_space<vmem>>, vector<8x256xf32>
    tpu.vector_store %arg8[%c8, %c0_23], %39 {strides = array<i32>} : memref<72x512xf32, #tpu.memory_space<vmem>>, vector<8x256xf32>,
    %c0_24 = arith.constant 0 : index
    %c113 = arith.constant 113 : index
    %41 = vector.load %arg7[%c0_24, %c113] : memref<8x1024xf32, #tpu.memory_space<vmem>>, vector<8x256xf32>
    %42 = arith.select %20, %41, %21 : vector<8x256xi1>, vector<8x256xf32>
    %c16 = arith.constant 16 : index
    %c0_25 = arith.constant 0 : index
    %43 = vector.load %arg8[%c16, %c0_25] : memref<72x512xf32, #tpu.memory_space<vmem>>, vector<8x256xf32>
    tpu.vector_store %arg8[%c16, %c0_25], %42 {strides = array<i32>} : memref<72x512xf32, #tpu.memory_space<vmem>>, vector<8x256xf32>,
    %c0_26 = arith.constant 0 : index
    %c127 = arith.constant 127 : index
    %44 = vector.load %arg7[%c0_26, %c127] : memref<8x1024xf32, #tpu.memory_space<vmem>>, vector<8x256xf32>
    %45 = arith.select %18, %44, %21 : vector<8x256xi1>, vector<8x256xf32>
    %c24 = arith.constant 24 : index
    %c0_27 = arith.constant 0 : index
    %46 = vector.load %arg8[%c24, %c0_27] : memref<72x512xf32, #tpu.memory_space<vmem>>, vector<8x256xf32>
    tpu.vector_store %arg8[%c24, %c0_27], %45 {strides = array<i32>} : memref<72x512xf32, #tpu.memory_space<vmem>>, vector<8x256xf32>,
    %c0_28 = arith.constant 0 : index
    %c128_29 = arith.constant 128 : index
    %47 = vector.load %arg7[%c0_28, %c128_29] : memref<8x1024xf32, #tpu.memory_space<vmem>>, vector<8x256xf32>
    %c32 = arith.constant 32 : index
    %c0_30 = arith.constant 0 : index
    %48 = vector.load %arg8[%c32, %c0_30] : memref<72x512xf32, #tpu.memory_space<vmem>>, vector<8x256xf32>
    tpu.vector_store %arg8[%c32, %c0_30], %47 {strides = array<i32>} : memref<72x512xf32, #tpu.memory_space<vmem>>, vector<8x256xf32>,
    %c0_31 = arith.constant 0 : index
    %c129 = arith.constant 129 : index
    %49 = vector.load %arg7[%c0_31, %c129] : memref<8x1024xf32, #tpu.memory_space<vmem>>, vector<8x256xf32>
    %50 = arith.select %20, %49, %21 : vector<8x256xi1>, vector<8x256xf32>
    %c40 = arith.constant 40 : index
    %c0_32 = arith.constant 0 : index
    %51 = vector.load %arg8[%c40, %c0_32] : memref<72x512xf32, #tpu.memory_space<vmem>>, vector<8x256xf32>
    tpu.vector_store %arg8[%c40, %c0_32], %50 {strides = array<i32>} : memref<72x512xf32, #tpu.memory_space<vmem>>, vector<8x256xf32>,
    %c0_33 = arith.constant 0 : index
    %c143 = arith.constant 143 : index
    %52 = vector.load %arg7[%c0_33, %c143] : memref<8x1024xf32, #tpu.memory_space<vmem>>, vector<8x256xf32>
    %53 = arith.select %18, %52, %21 : vector<8x256xi1>, vector<8x256xf32>
    %c48 = arith.constant 48 : index
    %c0_34 = arith.constant 0 : index
    %54 = vector.load %arg8[%c48, %c0_34] : memref<72x512xf32, #tpu.memory_space<vmem>>, vector<8x256xf32>
    tpu.vector_store %arg8[%c48, %c0_34], %53 {strides = array<i32>} : memref<72x512xf32, #tpu.memory_space<vmem>>, vector<8x256xf32>,
    %c0_35 = arith.constant 0 : index
    %c144 = arith.constant 144 : index
    %55 = vector.load %arg7[%c0_35, %c144] : memref<8x1024xf32, #tpu.memory_space<vmem>>, vector<8x256xf32>
    %c56 = arith.constant 56 : index
    %c0_36 = arith.constant 0 : index
    %56 = vector.load %arg8[%c56, %c0_36] : memref<72x512xf32, #tpu.memory_space<vmem>>, vector<8x256xf32>
    tpu.vector_store %arg8[%c56, %c0_36], %55 {strides = array<i32>} : memref<72x512xf32, #tpu.memory_space<vmem>>, vector<8x256xf32>,
    %c0_37 = arith.constant 0 : index
    %c145 = arith.constant 145 : index
    %57 = vector.load %arg7[%c0_37, %c145] : memref<8x1024xf32, #tpu.memory_space<vmem>>, vector<8x256xf32>
    %58 = arith.select %20, %57, %21 : vector<8x256xi1>, vector<8x256xf32>
    %c64 = arith.constant 64 : index
    %c0_38 = arith.constant 0 : index
    %59 = vector.load %arg8[%c64, %c0_38] : memref<72x512xf32, #tpu.memory_space<vmem>>, vector<8x256xf32>
    tpu.vector_store %arg8[%c64, %c0_38], %58 {strides = array<i32>} : memref<72x512xf32, #tpu.memory_space<vmem>>, vector<8x256xf32>,
    %c0_39 = arith.constant 0 : index
    %c623 = arith.constant 623 : index
    %60 = vector.load %arg7[%c0_39, %c623] : memref<8x1024xf32, #tpu.memory_space<vmem>>, vector<8x256xf32>
    %61 = arith.select %18, %60, %21 : vector<8x256xi1>, vector<8x256xf32>
    %c0_40 = arith.constant 0 : index
    %c256 = arith.constant 256 : index
    %62 = vector.load %arg8[%c0_40, %c256] : memref<72x512xf32, #tpu.memory_space<vmem>>, vector<8x256xf32>
    tpu.vector_store %arg8[%c0_40, %c256], %61 {strides = array<i32>} : memref<72x512xf32, #tpu.memory_space<vmem>>, vector<8x256xf32>,
    %c0_41 = arith.constant 0 : index
    %c624 = arith.constant 624 : index
    %63 = vector.load %arg7[%c0_41, %c624] : memref<8x1024xf32, #tpu.memory_space<vmem>>, vector<8x256xf32>
    %c8_42 = arith.constant 8 : index
    %c256_43 = arith.constant 256 : index
    %64 = vector.load %arg8[%c8_42, %c256_43] : memref<72x512xf32, #tpu.memory_space<vmem>>, vector<8x256xf32>
    tpu.vector_store %arg8[%c8_42, %c256_43], %63 {strides = array<i32>} : memref<72x512xf32, #tpu.memory_space<vmem>>, vector<8x256xf32>,
    %c0_44 = arith.constant 0 : index
    %c625 = arith.constant 625 : index
    %65 = vector.load %arg7[%c0_44, %c625] : memref<8x1024xf32, #tpu.memory_space<vmem>>, vector<8x256xf32>
    %66 = arith.select %20, %65, %21 : vector<8x256xi1>, vector<8x256xf32>
    %c16_45 = arith.constant 16 : index
    %c256_46 = arith.constant 256 : index
    %67 = vector.load %arg8[%c16_45, %c256_46] : memref<72x512xf32, #tpu.memory_space<vmem>>, vector<8x256xf32>
    tpu.vector_store %arg8[%c16_45, %c256_46], %66 {strides = array<i32>} : memref<72x512xf32, #tpu.memory_space<vmem>>, vector<8x256xf32>,
    %c0_47 = arith.constant 0 : index
    %c639 = arith.constant 639 : index
    %68 = vector.load %arg7[%c0_47, %c639] : memref<8x1024xf32, #tpu.memory_space<vmem>>, vector<8x256xf32>
    %69 = arith.select %18, %68, %21 : vector<8x256xi1>, vector<8x256xf32>
    %c24_48 = arith.constant 24 : index
    %c256_49 = arith.constant 256 : index
    %70 = vector.load %arg8[%c24_48, %c256_49] : memref<72x512xf32, #tpu.memory_space<vmem>>, vector<8x256xf32>
    tpu.vector_store %arg8[%c24_48, %c256_49], %69 {strides = array<i32>} : memref<72x512xf32, #tpu.memory_space<vmem>>, vector<8x256xf32>,
    %c0_50 = arith.constant 0 : index
    %c640_51 = arith.constant 640 : index
    %71 = vector.load %arg7[%c0_50, %c640_51] : memref<8x1024xf32, #tpu.memory_space<vmem>>, vector<8x256xf32>
    %c32_52 = arith.constant 32 : index
    %c256_53 = arith.constant 256 : index
    %72 = vector.load %arg8[%c32_52, %c256_53] : memref<72x512xf32, #tpu.memory_space<vmem>>, vector<8x256xf32>
    tpu.vector_store %arg8[%c32_52, %c256_53], %71 {strides = array<i32>} : memref<72x512xf32, #tpu.memory_space<vmem>>, vector<8x256xf32>,
    %c0_54 = arith.constant 0 : index
    %c641 = arith.constant 641 : index
    %73 = vector.load %arg7[%c0_54, %c641] : memref<8x1024xf32, #tpu.memory_space<vmem>>, vector<8x256xf32>
    %74 = arith.select %20, %73, %21 : vector<8x256xi1>, vector<8x256xf32>
    %c40_55 = arith.constant 40 : index
    %c256_56 = arith.constant 256 : index
    %75 = vector.load %arg8[%c40_55, %c256_56] : memref<72x512xf32, #tpu.memory_space<vmem>>, vector<8x256xf32>
    tpu.vector_store %arg8[%c40_55, %c256_56], %74 {strides = array<i32>} : memref<72x512xf32, #tpu.memory_space<vmem>>, vector<8x256xf32>,
    %c0_57 = arith.constant 0 : index
    %c655 = arith.constant 655 : index
    %76 = vector.load %arg7[%c0_57, %c655] : memref<8x1024xf32, #tpu.memory_space<vmem>>, vector<8x256xf32>
    %77 = arith.select %18, %76, %21 : vector<8x256xi1>, vector<8x256xf32>
    %c48_58 = arith.constant 48 : index
    %c256_59 = arith.constant 256 : index
    %78 = vector.load %arg8[%c48_58, %c256_59] : memref<72x512xf32, #tpu.memory_space<vmem>>, vector<8x256xf32>
    tpu.vector_store %arg8[%c48_58, %c256_59], %77 {strides = array<i32>} : memref<72x512xf32, #tpu.memory_space<vmem>>, vector<8x256xf32>,
    %c0_60 = arith.constant 0 : index
    %c656 = arith.constant 656 : index
    %79 = vector.load %arg7[%c0_60, %c656] : memref<8x1024xf32, #tpu.memory_space<vmem>>, vector<8x256xf32>
    %c56_61 = arith.constant 56 : index
    %c256_62 = arith.constant 256 : index
    %80 = vector.load %arg8[%c56_61, %c256_62] : memref<72x512xf32, #tpu.memory_space<vmem>>, vector<8x256xf32>
    tpu.vector_store %arg8[%c56_61, %c256_62], %79 {strides = array<i32>} : memref<72x512xf32, #tpu.memory_space<vmem>>, vector<8x256xf32>,
    %c0_63 = arith.constant 0 : index
    %c657 = arith.constant 657 : index
    %81 = vector.load %arg7[%c0_63, %c657] : memref<8x1024xf32, #tpu.memory_space<vmem>>, vector<8x256xf32>
    %82 = arith.select %20, %81, %21 : vector<8x256xi1>, vector<8x256xf32>
    %c64_64 = arith.constant 64 : index
    %c256_65 = arith.constant 256 : index
    %83 = vector.load %arg8[%c64_64, %c256_65] : memref<72x512xf32, #tpu.memory_space<vmem>>, vector<8x256xf32>
    tpu.vector_store %arg8[%c64_64, %c256_65], %82 {strides = array<i32>} : memref<72x512xf32, #tpu.memory_space<vmem>>, vector<8x256xf32>,
    %c0_66 = arith.constant 0 : index
    %c0_67 = arith.constant 0 : index
    %84 = vector.load %arg2[%c0_66, %c0_67] : memref<32x72xf32, #tpu.memory_space<vmem>>, vector<32x72xf32>
    %c0_68 = arith.constant 0 : index
    %c0_69 = arith.constant 0 : index
    %85 = vector.load %arg8[%c0_68, %c0_69] : memref<72x512xf32, #tpu.memory_space<vmem>>, vector<72x512xf32>
    %cst_70 = arith.constant dense<0.000000e+00> : vector<32x512xf32>
    %86 = tpu.matmul %84, %85, %cst_70 {dimension_numbers = #tpu.dot_dimension_numbers<[1], [0], [0], [1], [0, 0, 1, 1], [], []>} : vector<32x72xf32>, vector<72x512xf32>, vector<32x512xf32> -> vector<32x512xf32>
    %c0_71 = arith.constant 0 : index
    %c0_72 = arith.constant 0 : index
    %87 = vector.load %arg3[%c0_71, %c0_72] : memref<32x1xf32, #tpu.memory_space<vmem>>, vector<32x1xf32>
    %88 = vector.broadcast %87 : vector<32x1xf32> to vector<32x512xf32>
    %89 = arith.addf %86, %88 : vector<32x512xf32>
    %cst_73 = arith.constant 0.000000e+00 : f32
    %90 = vector.broadcast %cst_73 : f32 to vector<32x512xf32>
    %91 = arith.maximumf %89, %90 : vector<32x512xf32>
    %c0_74 = arith.constant 0 : index
    %c0_75 = arith.constant 0 : index
    %92 = vector.load %arg4[%c0_74, %c0_75] : memref<1x32xf32, #tpu.memory_space<vmem>>, vector<1x32xf32>
    %cst_76 = arith.constant dense<0.000000e+00> : vector<1x512xf32>
    %93 = tpu.matmul %92, %91, %cst_76 {dimension_numbers = #tpu.dot_dimension_numbers<[1], [0], [0], [1], [0, 0, 1, 1], [], []>} : vector<1x32xf32>, vector<32x512xf32>, vector<1x512xf32> -> vector<1x512xf32>
    %c0_77 = arith.constant 0 : index
    %94 = memref.load %arg5[%c0_77] : memref<1xf32, #tpu.memory_space<smem>>
    %95 = vector.broadcast %94 : f32 to vector<1x512xf32>
    %96 = arith.addf %93, %95 : vector<1x512xf32>
    %97 = vector.shape_cast %96 : vector<1x512xf32> to vector<1x1x512xf32>
    %c0_78 = arith.constant 0 : index
    %c0_79 = arith.constant 0 : index
    %c0_80 = arith.constant 0 : index
    %98 = vector.load %arg6[%c0_78, %c0_79, %c0_80] : memref<1x1x512xf32, #tpu.memory_space<vmem>>, vector<1x1x512xf32>
    tpu.vector_store %arg6[%c0_78, %c0_79, %c0_80], %97 {strides = array<i32>} : memref<1x1x512xf32, #tpu.memory_space<vmem>>, vector<1x1x512xf32>,
    return
  }
  func.func @transform_0(%arg0: i32) -> (i32, i32, i32) {
    %c0_i32 = arith.constant 0 : i32
    %c0_i32_0 = arith.constant 0 : i32
    %c0_i32_1 = arith.constant 0 : i32
    return %arg0, %c0_i32, %c0_i32_0 : i32, i32, i32
  }
  func.func @transform_1(%arg0: i32) -> (i32, i32) {
    %c0_i32 = arith.constant 0 : i32
    %c0_i32_0 = arith.constant 0 : i32
    %c0_i32_1 = arith.constant 0 : i32
    return %c0_i32, %c0_i32_0 : i32, i32
  }
  func.func @transform_2(%arg0: i32) -> (i32, i32) {
    %c0_i32 = arith.constant 0 : i32
    %c0_i32_0 = arith.constant 0 : i32
    %c0_i32_1 = arith.constant 0 : i32
    return %c0_i32, %c0_i32_0 : i32, i32
  }
  func.func @transform_3(%arg0: i32) -> (i32, i32) {
    %c0_i32 = arith.constant 0 : i32
    %c0_i32_0 = arith.constant 0 : i32
    %c0_i32_1 = arith.constant 0 : i32
    return %c0_i32, %c0_i32_0 : i32, i32
  }
  func.func @transform_4(%arg0: i32) -> i32 {
    %c0_i32 = arith.constant 0 : i32
    %c0_i32_0 = arith.constant 0 : i32
    return %c0_i32 : i32
  }
  func.func @transform_5(%arg0: i32) -> (i32, i32, i32) {
    %c0_i32 = arith.constant 0 : i32
    %c0_i32_0 = arith.constant 0 : i32
    %c0_i32_1 = arith.constant 0 : i32
    return %arg0, %c0_i32, %c0_i32_0 : i32, i32, i32
  }
}

</mosaic_0001>

<bundles_post_ra>
// kernel: tpu_custom_call.1
= control target key start
LH: loop header
LB: loop body
LE: loop exit
PB: predicated region body
PF: predicated region fallthrough
CT: control target
= control target key end

     0   :  { %11 = vsyncpa [#allocation6], 0  ;;  %s1419_s0 = inlined_call_operand.vmem [shape: f32[2,8,256], index: 0, kind: input, shape index: {}]   ;;  %s1420_s1 = inlined_call_operand.hbm [shape: f32[32,72], index: 1, kind: input, shape index: {}]   ;;  %s1421_s2 = inlined_call_operand.vmem [shape: f32[32,1], index: 2, kind: input, shape index: {}]   ;;  %s1422_s3 = inlined_call_operand.vmem [shape: f32[1,32], index: 3, kind: input, shape index: {}]   ;;  %s1423_s4 = inlined_call_operand.<no memory space> [shape: f32[1], index: 4, kind: input, shape index: {}]   ;;  %s1424_s5 = inlined_call_operand.hbm [shape: f32[1,1,512], index: 5, kind: output, shape index: {}]  }
   0x1   :  { %12 = vsyncpa [#allocation7], 0  ;;  %s1153_s18 = smov [#allocation5]   ;;  %s1105_s22 = scalar_lea.hbm %s1420_s1, 512 }
   0x2   :  { %s20_s19 = sshll.u32 %s1153_s18, 4  ;;  %p1106_p0 = scmp.ne.s32.totalorder %s1420_s1, %s1105_s22  ;;  %s21_s19 = int_to_ptr.vmem [resolvable:$true] %s20_s19 }
   0x3   :  { %p1109_p1 = scmp.lt.u32.totalorder %s1105_s22, %s1420_s1 }
   0x5   :  { %p1111_p2 = pnand %p1109_p1, %p1106_p0 }
   0x7   :  { %1114 = shalt.err (!%p1111_p2)
}
   0x8   :  { %s1115_s27 = scalar_lea.vmem %s21_s19, 512  ;;  %p1120_p4 = scmp.lt.s32.totalorder %s21_s19, %s21_s19 }
   0x9   :  { %p1116_p3 = scmp.ne.s32.totalorder %s21_s19, %s1115_s27  ;;  %p1121_p5 = scmp.lt.s32.totalorder %s1115_s27, %s1115_s27 }
   0xb   :  { %p1122_p6 = por %p1121_p5, %p1120_p4 }
   0xd   :  { %p1123_p7 = pnand %p1122_p6, %p1116_p3 }
   0xf   :  { %1126 = shalt.err (!%p1123_p7)
}
  0x10   :  { %s1154_s28 = smov 128   ;;  %s1155_s29 = smov 8  }
  0x11   :  { %26 = dma.hbm_to_vmem [thread:$0]  %s1420_s1, 512, %s21_s19, [#allocation6], %s1154_s28, %s1154_s28, %s1155_s29  }
  0x12   :  { %1149 = dma.done.wait [#allocation6], 512  }
  0x13   :  { %1150 = vsyncadd [#allocation6], 4294966784  ;;  %v1156_v0 = vmov 0.0   ;;  %s1157_s7 = smov 16   ;;  %s1158_s8 = smov 17   ;;  %v1218_v1 = vld [vmem:[%s1419_s0 + $0x10] sm:$0xff]  ;;  %v36_v15 = vlaneseq }
  0x14   :  { %549 = vmatprep.mubr.f32.mxu0 %v1156_v0  ;;  %638 = vmatprep.mubr.f32.mxu1 %v1156_v0  ;;  %v1223_v2 = vld [vmem:[%s1419_s0 + $0x18] sm:$0xff]  ;;  %v1228_v3 = vld [vmem:[%s1419_s0] sm:$0xff]  ;;  %v1235_v5 = vld [vmem:[%s1419_s0 + $0x8] sm:$0xff]  ;;  %s1159_s16 = smov 1   ;;  %s1160_s17 = smov 15   ;;  %v1165_v12 = vmov 0  }
  0x15   :  { %999 = vrot.lane.b32.xlu1 %v1156_v0, %s1157_s7  ;;  %994 = vrot.lane.b32.xlu0 %v1156_v0, %s1158_s8  ;;  %v1013_v4 = vpack.i.bf16 %v1223_v2, %v1218_v1  ;;  %v1003_v6 = vpack.i.bf16 %v1235_v5, %v1228_v3  ;;  %v1058_v7 = vpack.i.bf16 %v1156_v0, %v1223_v2  ;;  %s1161_s0 = smov 127   ;;  %s1162_s18 = smov 113   ;;  %v448_v10 = vld [vmem:[%s1421_s2] sm:$0xff]  ;;  %v449_v11 = vld [vmem:[%s1421_s2 + $0x8] sm:$0xff]  ;;  %v1265_v16 = vand.u32 127, %v36_v15  ;;  %v410_v33 = vld [vmem:[#allocation5 + $0x10] sm:$0xff] }
  0x16   :  { %v1053_v8 = vpack.i.bf16 %v1156_v0, %v1235_v5  ;;  %v1063_v9 = vpack.i.bf16 %v1218_v1, %v1228_v3  ;;  %s1163_s19 = smov 112   ;;  %s1164_s20 = smov 111   ;;  %1103 = vset.pattern.permute.xlu0 %v1165_v12  ;;  %1104 = vset.pattern.permute.xlu1 %v1165_v12  ;;  %v450_v13 = vld [vmem:[%s1421_s2 + $0x10] sm:$0xff]  ;;  %v451_v14 = vld [vmem:[%s1421_s2 + $0x18] sm:$0xff]  ;;  %vm153_vm0 = vcmask 7168   ;;  %vm92_vm1 = vcmask 138240  }
  0x17   :  { %v38_v19 = vadd.s32 128, %v1265_v16  ;;  %v43_v20 = vand.u32 15, %v1265_v16  ;;  %vm113_vm2 = vcmask 130048   ;;  %vm132_vm3 = vcmask 121856   ;;  %v409_v52 = vld [vmem:[#allocation5 + $0x8] sm:$0xff] }
  0x18   :  { %vm1166_vm7 = vmmov 1   ;;  %vm178_vm12 = vcmask 1039360  }
  0x19   :  { %1014 = vrot.lane.b32.xlu1 %v1013_v4, %s1158_s8  ;;  %1004 = vrot.lane.b32.xlu0 %v1003_v6, %s1158_s8  ;;  %v50_v22 = vand.u32 15, %v38_v19  ;;  %vm1271_vm4 = vcmp.ge.s32.totalorder %v43_v20, 1  ;;  %vm1328_vm11 = vcmp.le.s32.totalorder %v43_v20, 14 }
  0x1a   :  { %vm1301_vm9 = vmpackc.low %vm1166_vm7, %vm1271_vm4 }
  0x1b   :  { %vm1275_vm5 = vcmp.ge.s32.totalorder %v50_v22, 1  ;;  %vm1279_vm6 = vcmp.le.s32.totalorder %v50_v22, 14  ;;  %vm923_vm13 = vmpackc.low %vm1271_vm4, %vm1328_vm11  ;;  %vm682_vm4 = vcmask 261120  }
  0x1c   :  { %vm1289_vm8 = vmpackc.low %vm1166_vm7, %vm1275_vm5 }
  0x1d   :  { %1019 = vrot.lane.b32.xlu1 %v1013_v4, %s1157_s7  ;;  %1009 = vrot.lane.b32.xlu0 %v1003_v6, %s1157_s7  ;;  %vm920_vm10 = vmpackc.low %vm1275_vm5, %vm1279_vm6  ;;  %vm859_vm5 = vcmp.lt.s32.totalorder %v36_v15, 512 }
  0x1e   :  { %vm926_vm14 = vmpackc.low %vm1279_vm6, %vm1166_vm7 }
  0x1f   :  { %vm929_vm15 = vmpackc.low %vm1328_vm11, %vm1166_vm7 }
  0x21   :  { %1029 = vrot.lane.b32.xlu1 %v1003_v6, %s1159_s16  ;;  %1024 = vrot.lane.b32.xlu0 %v1003_v6, %s1160_s17 }
  0x25   :  { %1039 = vrot.lane.b32.xlu1 %v1013_v4, %s1159_s16  ;;  %1034 = vrot.lane.b32.xlu0 %v1013_v4, %s1160_s17 }
  0x29   :  { %1049 = vrot.lane.b32.xlu1 %v1156_v0, %s1159_s16  ;;  %1044 = vrot.lane.b32.xlu0 %v1156_v0, %s1160_s17 }
  0x2d   :  { %1059 = vrot.lane.b32.xlu1 %v1058_v7, %s1161_s0  ;;  %1054 = vrot.lane.b32.xlu0 %v1053_v8, %s1161_s0 }
  0x31   :  { %1069 = vrot.lane.b32.xlu1 %v1053_v8, %s1162_s18  ;;  %1064 = vrot.lane.b32.xlu0 %v1063_v9, %s1161_s0 }
  0x35   :  { %1079 = vrot.lane.b32.xlu1 %v1058_v7, %s1162_s18  ;;  %1074 = vrot.lane.b32.xlu0 %v1053_v8, %s1163_s19 }
  0x39   :  { %1089 = vrot.lane.b32.xlu1 %v1063_v9, %s1162_s18  ;;  %1084 = vrot.lane.b32.xlu0 %v1058_v7, %s1163_s19 }
  0x3d   :  { %235 = vrot.lane.b32.xlu1 %v1235_v5, %s1164_s20  ;;  %1094 = vrot.lane.b32.xlu0 %v1063_v9, %s1163_s19 }
  0x41   :  { %396 = vrot.lane.b32.xlu1 %v1223_v2, %s1164_s20  ;;  %1099 = vrot.lane.b32.xlu0 %v1156_v0, %s1164_s20 }
  0x45   :  { %394 = vrot.lane.b32.xlu1 %v1218_v1, %s1164_s20  ;;  %233 = vrot.lane.b32.xlu0 %v1228_v3, %s1164_s20 }
  0x49   :  { %459 = vperm.xlu1 %1104, %v449_v11   ;;  %454 = vperm.xlu0 %1103, %v448_v10  }
  0x4d   :  { %464 = vperm.xlu1 %1104, %v450_v13   ;;  %469 = vperm.xlu0 %1103, %v451_v14  }
  0x87   :  { %v1000_v17 = vpop.permute.xlu1 %999  ;;  %v995_v18 = vpop.permute.xlu0 %994 }
  0x88   :  { %v1002_v29 = vunpack.i.h.bf16 %v1000_v17  ;;  %v997_v30 = vunpack.i.h.bf16 %v995_v18  ;;  %v1001_v34 = vunpack.i.l.bf16 %v1000_v17  ;;  %v996_v35 = vunpack.i.l.bf16 %v995_v18 }
  0x8b   :  { %v1015_v21 = vpop.permute.xlu1 %1014  ;;  %v1005_v23 = vpop.permute.xlu0 %1004 }
  0x8c   :  { %v1017_v24 = vunpack.i.h.bf16 %v1015_v21  ;;  %v1016_v25 = vunpack.i.l.bf16 %v1015_v21  ;;  %v1007_v26 = vunpack.i.h.bf16 %v1005_v23  ;;  %v1006_v27 = vunpack.i.l.bf16 %v1005_v23  ;;  %v411_v21 = vld [vmem:[#allocation5 + $0x18] sm:$0xff] }
  0x8e   :  { %v261_v41 = vsel %vm92_vm1, %v1016_v25, %v1017_v24  ;;  %v260_v42 = vsel %vm92_vm1, %v997_v30, %v1016_v25  ;;  %v94_v43 = vsel %vm92_vm1, %v1006_v27, %v1007_v26  ;;  %v93_v46 = vsel %vm92_vm1, %v996_v35, %v1006_v27 }
  0x8f   :  { %v1020_v31 = vpop.permute.xlu1 %1019  ;;  %v1010_v38 = vpop.permute.xlu0 %1009  ;;  %vm220_vm1 = vcmask 916480  }
  0x90   :  { %v1022_v36 = vunpack.i.h.bf16 %v1020_v31  ;;  %v1021_v37 = vunpack.i.l.bf16 %v1020_v31  ;;  %v1012_v39 = vunpack.i.h.bf16 %v1010_v38  ;;  %v1011_v40 = vunpack.i.l.bf16 %v1010_v38 }
  0x92   :  { %v281_v45 = vsel %vm113_vm2, %v1021_v37, %v1022_v36  ;;  %v280_v47 = vsel %vm113_vm2, %v1002_v29, %v1021_v37  ;;  %v115_v49 = vsel %vm113_vm2, %v1011_v40, %v1012_v39  ;;  %v114_v51 = vsel %vm113_vm2, %v1001_v34, %v1011_v40 }
  0x93   :  { %v1030_v48 = vpop.permute.xlu1 %1029  ;;  %v937_v50 = vpack.c.bf16 %v281_v45, %v261_v41  ;;  %v940_v53 = vpack.c.bf16 %v280_v47, %v260_v42  ;;  %v1025_v56 = vpop.permute.xlu0 %1024  ;;  %v913_v57 = vpack.c.bf16 %v115_v49, %v94_v43  ;;  %v916_v58 = vpack.c.bf16 %v114_v51, %v93_v46 }
  0x94   :  { %v1032_v54 = vunpack.i.h.bf16 %v1030_v48  ;;  %v1031_v55 = vunpack.i.l.bf16 %v1030_v48  ;;  %v1027_v59 = vunpack.i.h.bf16 %v1025_v56  ;;  %v1026_v60 = vunpack.i.l.bf16 %v1025_v56 }
  0x95   :  { %939 = vmatprep.subr.msk.bf16.mxu1 %vm1289_vm8, %v937_v50  ;;  %915 = vmatprep.subr.msk.bf16.mxu0 %vm1289_vm8, %v913_v57  ;;  %vm239_vm2 = vcmask 908288  }
  0x96   :  { %v155_v61 = vsel %vm153_vm0, %v1031_v55, %v1032_v54  ;;  %942 = vmatpush1.bf16.msk.msra.mxu1 %vm1301_vm9, %v940_v53  ;;  %v134_v62 = vsel %vm132_vm3, %v1026_v60, %v1027_v59  ;;  %918 = vmatpush1.bf16.msk.msra.mxu0 %vm1301_vm9, %v916_v58 }
  0x97   :  { %v1040_v63 = vpop.permute.xlu1 %1039  ;;  %v919_v4 = vpack.c.bf16 %v155_v61, %v134_v62  ;;  %v1035_v8 = vpop.permute.xlu0 %1034 }
  0x98   :  { %v1042_v6 = vunpack.i.h.bf16 %v1040_v63  ;;  %v1041_v7 = vunpack.i.l.bf16 %v1040_v63  ;;  %v1037_v9 = vunpack.i.h.bf16 %v1035_v8  ;;  %v1036_v10 = vunpack.i.l.bf16 %v1035_v8 }
  0x99   :  { %921 = vmatprep.subr.msk.bf16.mxu0 %vm920_vm10, %v919_v4 }
  0x9a   :  { %v319_v11 = vsel %vm153_vm0, %v1041_v7, %v1042_v6  ;;  %v299_v12 = vsel %vm132_vm3, %v1036_v10, %v1037_v9 }
  0x9b   :  { %v1050_v13 = vpop.permute.xlu1 %1049  ;;  %v943_v14 = vpack.c.bf16 %v319_v11, %v299_v12  ;;  %v1045_v19 = vpop.permute.xlu0 %1044 }
  0x9c   :  { %v1052_v17 = vunpack.i.h.bf16 %v1050_v13  ;;  %v1051_v18 = vunpack.i.l.bf16 %v1050_v13  ;;  %v1047_v22 = vunpack.i.h.bf16 %v1045_v19  ;;  %v1046_v23 = vunpack.i.l.bf16 %v1045_v19 }
  0x9d   :  { %945 = vmatprep.subr.msk.bf16.mxu1 %vm920_vm10, %v943_v14 }
  0x9e   :  { %v154_v24 = vsel %vm153_vm0, %v1051_v18, %v1031_v55  ;;  %v318_v25 = vsel %vm153_vm0, %v1052_v17, %v1041_v7  ;;  %v133_v26 = vsel %vm132_vm3, %v1046_v23, %v1026_v60  ;;  %v298_v16 = vsel %vm132_vm3, %v1047_v22, %v1036_v10 }
  0x9f   :  { %v1060_v20 = vpop.permute.xlu1 %1059  ;;  %v922_v27 = vpack.c.bf16 %v154_v24, %v133_v26  ;;  %v946_v29 = vpack.c.bf16 %v318_v25, %v298_v16  ;;  %v1055_v32 = vpop.permute.xlu0 %1054  ;;  %vm199_vm0 = vcmask 924672   ;;  %vm472_vm3 = vcmask 588800  }
  0xa0   :  { %v1062_v30 = vunpack.i.h.bf16 %v1060_v20  ;;  %v1061_v31 = vunpack.i.l.bf16 %v1060_v20  ;;  %v1057_v34 = vunpack.i.h.bf16 %v1055_v32  ;;  %v1056_v35 = vunpack.i.l.bf16 %v1055_v32  ;;  %v408_v20 = vld [vmem:[#allocation5] sm:$0xff] }
  0xa1   :  { %924 = vmatpush1.bf16.msk.msra.mxu0 %vm923_vm13, %v922_v27  ;;  %948 = vmatpush1.bf16.msk.msra.mxu1 %vm923_vm13, %v946_v29 }
  0xa2   :  { %v343_v36 = vsel %vm178_vm12, %v1061_v31, %v1062_v30  ;;  %v180_v28 = vsel %vm178_vm12, %v1056_v35, %v1057_v34 }
  0xa3   :  { %v949_v37 = vpack.c.bf16 %v343_v36, %v1223_v2  ;;  %v1070_v38 = vpop.permute.xlu1 %1069  ;;  %v925_v39 = vpack.c.bf16 %v180_v28, %v1235_v5  ;;  %v1065_v40 = vpop.permute.xlu0 %1064 }
  0xa4   :  { %v1067_v41 = vunpack.i.h.bf16 %v1065_v40  ;;  %v1066_v42 = vunpack.i.l.bf16 %v1065_v40  ;;  %v1072_v43 = vunpack.i.h.bf16 %v1070_v38  ;;  %v1071_v45 = vunpack.i.l.bf16 %v1070_v38 }
  0xa5   :  { %951 = vmatprep.subr.msk.bf16.mxu1 %vm926_vm14, %v949_v37  ;;  %927 = vmatprep.subr.msk.bf16.mxu0 %vm926_vm14, %v925_v39 }
  0xa6   :  { %v342_v46 = vsel %vm178_vm12, %v1067_v41, %v1061_v31  ;;  %v179_v47 = vsel %vm178_vm12, %v1066_v42, %v1056_v35  ;;  %v201_v53 = vsel %vm199_vm0, %v1071_v45, %v1072_v43 }
  0xa7   :  { %v1080_v48 = vpop.permute.xlu1 %1079  ;;  %v952_v2 = vpack.c.bf16 %v342_v46, %v1218_v1  ;;  %v928_v5 = vpack.c.bf16 %v179_v47, %v1228_v3  ;;  %v1075_v49 = vpop.permute.xlu0 %1074 }
  0xa8   :  { %v1077_v50 = vunpack.i.h.bf16 %v1075_v49  ;;  %v1076_v51 = vunpack.i.l.bf16 %v1075_v49  ;;  %v1082_v54 = vunpack.i.h.bf16 %v1080_v48  ;;  %v1081_v55 = vunpack.i.l.bf16 %v1080_v48 }
  0xa9   :  { %930 = vmatpush1.bf16.msk.msra.mxu0 %vm929_vm15, %v928_v5  ;;  %954 = vmatpush1.bf16.msk.msra.mxu1 %vm929_vm15, %v952_v2 }
  0xaa   :  { %v222_v56 = vsel %vm220_vm1, %v1076_v51, %v1077_v50  ;;  %v363_v1 = vsel %vm199_vm0, %v1081_v55, %v1082_v54 }
  0xab   :  { %v1090_v57 = vpop.permute.xlu1 %1089  ;;  %v931_v58 = vpack.c.bf16 %v222_v56, %v201_v53  ;;  %v1085_v59 = vpop.permute.xlu0 %1084 }
  0xac   :  { %v1087_v60 = vunpack.i.h.bf16 %v1085_v59  ;;  %v1086_v61 = vunpack.i.l.bf16 %v1085_v59  ;;  %v1092_v3 = vunpack.i.h.bf16 %v1090_v57  ;;  %v1091_v62 = vunpack.i.l.bf16 %v1090_v57 }
  0xad   :  { %933 = vmatprep.subr.msk.bf16.mxu0 %vm1289_vm8, %v931_v58 }
  0xae   :  { %v383_v63 = vsel %vm220_vm1, %v1086_v61, %v1087_v60  ;;  %v200_v10 = vsel %vm199_vm0, %v1091_v62, %v1071_v45  ;;  %v362_v11 = vsel %vm199_vm0, %v1092_v3, %v1081_v55 }
  0xaf   :  { %v236_v4 = vpop.permute.xlu1 %235  ;;  %v955_v6 = vpack.c.bf16 %v383_v63, %v363_v1  ;;  %v1095_v7 = vpop.permute.xlu0 %1094 }
  0xb0   :  { %v1097_v8 = vunpack.i.h.bf16 %v1095_v7  ;;  %v1096_v9 = vunpack.i.l.bf16 %v1095_v7 }
  0xb1   :  { %957 = vmatprep.subr.msk.bf16.mxu1 %vm1289_vm8, %v955_v6 }
  0xb2   :  { %v221_v12 = vsel %vm220_vm1, %v1096_v9, %v1076_v51  ;;  %v382_v13 = vsel %vm220_vm1, %v1097_v8, %v1086_v61 }
  0xb3   :  { %v397_v14 = vpop.permute.xlu1 %396  ;;  %v934_v17 = vpack.c.bf16 %v221_v12, %v200_v10  ;;  %v958_v18 = vpack.c.bf16 %v382_v13, %v362_v11  ;;  %v1100_v19 = vpop.permute.xlu0 %1099 }
  0xb4   :  { %v1102_v22 = vunpack.i.h.bf16 %v1100_v19  ;;  %v1101_v23 = vunpack.i.l.bf16 %v1100_v19 }
  0xb5   :  { %936 = vmatpush1.bf16.msk.msra.mxu0 %vm1301_vm9, %v934_v17  ;;  %960 = vmatpush1.bf16.msk.msra.mxu1 %vm1301_vm9, %v958_v18 }
  0xb6   :  { %v241_v24 = vsel %vm239_vm2, %v236_v4, %v1101_v23  ;;  %v401_v25 = vsel %vm239_vm2, %v397_v14, %v1102_v22 }
  0xb7   :  { %v395_v44 = vpop.permute.xlu1 %394  ;;  %v234_v16 = vpop.permute.xlu0 %233  ;;  %899 = vmatprep.subr.msk.mxu0 %vm1279_vm6, %v241_v24  ;;  %911 = vmatprep.subr.msk.mxu1 %vm1279_vm6, %v401_v25 }
  0xb8   :  { %v400_v26 = vsel %vm239_vm2, %v395_v44, %v397_v14  ;;  %v240_v27 = vsel %vm239_vm2, %v234_v16, %v236_v4 }
  0xb9   :  { %900 = vmatpush1.msk.msra.mxu0 %vm1328_vm11, %v240_v27  ;;  %912 = vmatpush1.msk.msra.mxu1 %vm1328_vm11, %v400_v26 }
  0xba   :  { %879 = vmatmul.mubr.msk.f32.vlgmr.msra.gmra.mrb[0].mxu0 %vm472_vm3, %v408_v20  ;;  %883 = vmatmul.mubr.msk.f32.vlgmr.msra.gmra.mrb[0].mxu1 %vm472_vm3, %v408_v20 }
  0xbb   :  { %555 = vmatprep.mubr.f32.mxu0 %v1156_v0  ;;  %644 = vmatprep.mubr.f32.mxu1 %v1156_v0 }
  0xbe   :  { %880 = vmatmul.mubr.msk.f32.gmra.mrb[2].mxu0 %vm472_vm3, %v409_v52  ;;  %884 = vmatmul.mubr.msk.f32.gmra.mrb[2].mxu1 %vm472_vm3, %v409_v52  ;;  %v679_v52 = vld [vmem:[%s1422_s3] sm:$0x1]  ;;  %s1168_s3 = smov [#allocation8]  }
  0xbf   :  { %561 = vmatprep.mubr.f32.mxu0 %v1156_v0  ;;  %650 = vmatprep.mubr.f32.mxu1 %v1156_v0  ;;  %s868_s7 = sshll.u32 %s1168_s3, 4  ;;  %s869_s7 = int_to_ptr.vmem [resolvable:$true] %s868_s7 }
  0xc0   :  { %p1132_p9 = scmp.lt.s32.totalorder %s869_s7, %s869_s7 }
  0xc2   :  { %881 = vmatmul.mubr.msk.f32.gmra.mrb[4].mxu0 %vm472_vm3, %v410_v33  ;;  %885 = vmatmul.mubr.msk.f32.gmra.mrb[4].mxu1 %vm472_vm3, %v410_v33  ;;  %v1167_v33 = vmov 1966171168  }
  0xc3   :  { %567 = vmatprep.mubr.f32.mxu0 %v1156_v0  ;;  %656 = vmatprep.mubr.f32.mxu1 %v1156_v0 }
  0xc6   :  { %882 = vmatmul.mubr.msk.f32.gmra.mrb[6].mxu0 %vm472_vm3, %v411_v21  ;;  %886 = vmatmul.mubr.msk.f32.gmra.mrb[6].mxu1 %vm472_vm3, %v411_v21  ;;  %v835_v21 = vunpack.c.l.s4 %v1167_v33 }
  0xc7   :  { %750 = vmatprep.mubr.f32.mxu0 %v1156_v0  ;;  %821 = vmatprep.mubr.f32.mxu1 %v1156_v0 }
  0xc8   :  { %v455_v29 = vpop.permute.xlu0 %454  ;;  %v460_v30 = vpop.permute.xlu1 %459 }
  0xcc   :  { %v465_v49 = vpop.permute.xlu1 %464  ;;  %v470_v3 = vpop.permute.xlu0 %469 }
 0x18d   :  { %v551_v31 = vpop.f32.mrb[0].mxu0  ;;  %v640_v32 = vpop.f32.mrb[0].mxu1 }
 0x18e   :  { %v553_v34 = vpop.f32.mrb[1].mxu0  ;;  %v642_v35 = vpop.f32.mrb[1].mxu1  ;;  %v552_v36 = vadd.f32 %v551_v31, %v455_v29  ;;  %v641_v37 = vadd.f32 %v640_v32, %v455_v29  ;;  %v838_v31 = vshrl.u32 %v36_v15, 7 }
 0x18f   :  { %v554_v28 = vadd.f32 %v553_v34, %v455_v29  ;;  %v643_v38 = vadd.f32 %v642_v35, %v455_v29  ;;  %v681_v29 = vstv %s1423_s4  ;;  %s1127_s4 = scalar_lea.vmem %s869_s7, 64 }
 0x190   :  { %v663_v48 = vmax.f32 %v552_v36, 0.0  ;;  %v665_v0 = vmax.f32 %v641_v37, 0.0  ;;  %p1128_p8 = scmp.ne.s32.totalorder %s869_s7, %s1127_s4  ;;  %p1133_p10 = scmp.lt.s32.totalorder %s1127_s4, %s1127_s4 }
 0x191   :  { %v557_v39 = vpop.f32.mrb[2].mxu0  ;;  %v646_v40 = vpop.f32.mrb[2].mxu1  ;;  %v664_v50 = vmax.f32 %v554_v28, 0.0  ;;  %v666_v51 = vmax.f32 %v643_v38, 0.0 }
 0x192   :  { %v558_v41 = vadd.f32 %v557_v39, %v460_v30  ;;  %v647_v42 = vadd.f32 %v646_v40, %v460_v30  ;;  %v559_v43 = vpop.f32.mrb[3].mxu0  ;;  %v648_v45 = vpop.f32.mrb[3].mxu1  ;;  %p1134_p11 = por %p1133_p10, %p1132_p9 }
 0x193   :  { %v560_v46 = vadd.f32 %v559_v43, %v460_v30  ;;  %v649_v47 = vadd.f32 %v648_v45, %v460_v30  ;;  %v836_v30 = vunpack.c.0.s8 %v835_v21 }
 0x194   :  { %v667_v2 = vmax.f32 %v558_v41, 0.0  ;;  %v669_v5 = vmax.f32 %v647_v42, 0.0  ;;  %p1135_p12 = pnand %p1134_p11, %p1128_p8 }
 0x195   :  { %v668_v53 = vmax.f32 %v560_v46, 0.0  ;;  %v670_v54 = vmax.f32 %v649_v47, 0.0  ;;  %v563_v55 = vpop.f32.mrb[4].mxu0  ;;  %v652_v56 = vpop.f32.mrb[4].mxu1  ;;  %v839_v39 = vsub.s32 %v836_v30, %v838_v31 }
 0x196   :  { %v963_v57 = vpack.c.bf16 %v667_v2, %v663_v48  ;;  %v971_v58 = vpack.c.bf16 %v669_v5, %v665_v0  ;;  %v565_v59 = vpop.f32.mrb[5].mxu0  ;;  %v654_v60 = vpop.f32.mrb[5].mxu1  ;;  %v564_v62 = vadd.f32 %v563_v55, %v465_v49  ;;  %v653_v63 = vadd.f32 %v652_v56, %v465_v49 }
 0x197   :  { %v961_v61 = vpack.c.bf16 %v668_v53, %v664_v50  ;;  %v969_v1 = vpack.c.bf16 %v670_v54, %v666_v51  ;;  %v566_v4 = vadd.f32 %v565_v59, %v465_v49  ;;  %v655_v6 = vadd.f32 %v654_v60, %v465_v49 }
 0x198   :  { %v671_v17 = vmax.f32 %v564_v62, 0.0  ;;  %v673_v18 = vmax.f32 %v653_v63, 0.0 }
 0x199   :  { %v569_v7 = vpop.f32.mrb[6].mxu0  ;;  %v658_v8 = vpop.f32.mrb[6].mxu1  ;;  %962 = vmatprep.subr.bf16.mxu0 %v961_v61  ;;  %970 = vmatprep.subr.bf16.mxu1 %v969_v1  ;;  %v672_v23 = vmax.f32 %v566_v4, 0.0  ;;  %v674_v44 = vmax.f32 %v655_v6, 0.0 }
 0x19a   :  { %v570_v9 = vadd.f32 %v569_v7, %v470_v3  ;;  %v659_v10 = vadd.f32 %v658_v8, %v470_v3  ;;  %v571_v11 = vpop.f32.mrb[7].mxu0  ;;  %v660_v12 = vpop.f32.mrb[7].mxu1  ;;  %964 = vmatpush1.bf16.msra.mxu0 %v963_v57  ;;  %972 = vmatpush1.bf16.msra.mxu1 %v971_v58 }
 0x19b   :  { %v572_v13 = vadd.f32 %v571_v11, %v470_v3  ;;  %v661_v14 = vadd.f32 %v660_v12, %v470_v3 }
 0x19c   :  { %v675_v19 = vmax.f32 %v570_v9, 0.0  ;;  %v677_v22 = vmax.f32 %v659_v10, 0.0 }
 0x19d   :  { %v676_v24 = vmax.f32 %v572_v13, 0.0  ;;  %v678_v25 = vmax.f32 %v661_v14, 0.0 }
 0x19e   :  { %v967_v26 = vpack.c.bf16 %v675_v19, %v671_v17  ;;  %v975_v16 = vpack.c.bf16 %v677_v22, %v673_v18 }
 0x19f   :  { %v965_v20 = vpack.c.bf16 %v676_v24, %v672_v23  ;;  %v973_v27 = vpack.c.bf16 %v678_v25, %v674_v44 }
 0x1a1   :  { %966 = vmatprep.subr.bf16.mxu0 %v965_v20  ;;  %974 = vmatprep.subr.bf16.mxu1 %v973_v27 }
 0x1a2   :  { %968 = vmatpush1.bf16.msra.mxu0 %v967_v26  ;;  %976 = vmatpush1.bf16.msra.mxu1 %v975_v16 }
 0x1a5   :  { %887 = vmatmul.mubr.msk.f32.vlgmr.msra.gmra.mrb[8].mxu0 %vm682_vm4, %v679_v52  ;;  %888 = vmatmul.mubr.msk.f32.vlgmr.msra.gmra.mrb[8].mxu1 %vm682_vm4, %v679_v52 }
 0x278   :  { %v752_v32 = vpop.f32.mrb[8].mxu0  ;;  %v823_v34 = vpop.f32.mrb[8].mxu1 }
 0x279   :  { %v753_v35 = vadd.f32 %v752_v32, %v681_v29  ;;  %v824_v36 = vadd.f32 %v823_v34, %v681_v29  ;;  %v754_v37 = vpop.f32.mrb[9].mxu0  ;;  %v825_v28 = vpop.f32.mrb[9].mxu1 }
 0x27a   :  { %v755_v38 = vadd.f32 %v754_v37, %v681_v29  ;;  %v826_v40 = vadd.f32 %v825_v28, %v681_v29 }
 0x27c   :  { %v832_v41 = vcombine.low %v753_v35, %v755_v38  ;;  %v833_v42 = vcombine.low %v824_v36, %v826_v40 }
 0x27e   :  { %v840_v43 = vrot.slane %v832_v41, %v839_v39  ;;  %v847_v45 = vrot.slane %v833_v42, %v839_v39 }
 0x280   :  { %v848_v46 = vcombine.low %v840_v43, %v847_v45 }
 0x282   :  { %v855_v47 = vrot.slane %v848_v46, %v839_v39 }
 0x284   :  { %861 = vst.msk [vmem:[#allocation8] sm:$0xf] %vm859_vm5, %v855_v47 }
 0x285   :  { %1138 = shalt.err (!%p1135_p12)
}
 0x286   :  { %s1139_s10 = scalar_lea.hbm %s1424_s5, 64 }
 0x287   :  { %p1140_p13 = scmp.ne.s32.totalorder %s1424_s5, %s1139_s10  ;;  %p1143_p0 = scmp.lt.u32.totalorder %s1139_s10, %s1424_s5 }
 0x289   :  { %p1145_p1 = pnand %p1143_p0, %p1140_p13 }
 0x28b   :  { %1148 = shalt.err (!%p1145_p1)
}
 0x28c   :  { %871 = dma.vmem_to_hbm [thread:$0]  %s869_s7, 64, %s1424_s5, [#allocation7]  }
 0x28d   :  { %1151 = dma.done.wait [#allocation7], 64  }
 0x28e   :  { %1152 = vsyncadd [#allocation7], 4294967232 }
 0x28f   :  { %875 = vsyncpa [#allocation6], 1 }
 0x290   :  { %876 = vsyncpa [#allocation7], 1 }

</bundles_post_ra>
